<compile_context>
chip_gen: v5e
topology: v5e:2x2
jax: 0.10.0
libtpu: 0.0.40
codegen_flags: <defaults>
</compile_context>

<pallas_src>
import functools

import jax
import jax.numpy as jnp
from jax import lax
from jax.experimental import pallas as pl
from jax.experimental.pallas import tpu as pltpu

_LANES = 128
_NUM_SPLITS = 2          # leading "parallel" grid axis (v7x megacore split)
_MAX_TILE_ROWS = 1024    # 1024 x 128 x 4B = 512 KiB per input buffer


def _round_up(x, m):
    return ((x + m - 1) // m) * m


def _coral_loss_kernel(x_ref, d_ref, acc_ref, *, total, tile_rows, inner_grid):
    c = pl.program_id(0)   # parallel split index
    i = pl.program_id(1)   # row-tile index within this split

    @pl.when(i == 0)
    def _zero():
        acc_ref[...] = jnp.zeros_like(acc_ref)

    x = x_ref[...].astype(jnp.float32)        # (tile_rows, 128) logits
    d = d_ref[...]                            # (tile_rows, 128) int32: label - threshold

    # Global flat element index of every lane in this tile (for padding mask).
    start_row = (c * inner_grid + i) * tile_rows
    row = lax.broadcasted_iota(jnp.int32, x.shape, 0)
    lane = lax.broadcasted_iota(jnp.int32, x.shape, 1)
    flat = (start_row + row) * _LANES + lane
    valid = flat < total

    # labels_bin[:, i] = (labels > i)  <=>  (label - threshold) > 0
    y = (d > 0).astype(jnp.float32)

    # Numerically-stable BCE-with-logits (same formula PyTorch uses):
    #   max(x, 0) - x*y + log(1 + exp(-|x|))
    # TODO(synk): on v6e/v7x the softplus term could run in bf16 on the EUP for
    # ~2x transcendental throughput; kept in f32 here for cross-gen portability.
    per = jnp.maximum(x, 0.0) - x * y + jnp.log1p(jnp.exp(-jnp.abs(x)))
    per = jnp.where(valid, per, 0.0)          # padded lanes contribute exactly 0

    # Full-width f32 vector accumulator (reduced once in the wrapper).
    acc_ref[...] += per


def coral_ordinal_loss(logits, labels, num_classes):
    """logits: (B, num_classes-1) float; labels: (B,) int -> scalar f32 loss."""
    k = num_classes - 1
    b = logits.shape[0]
    assert logits.shape == (b, k)
    total = b * k

    rows = pl.cdiv(total, _LANES)
    tile_rows = min(_MAX_TILE_ROWS, _round_up(rows, 8))
    rows_padded = _round_up(rows, _NUM_SPLITS * tile_rows)
    inner_grid = rows_padded // (_NUM_SPLITS * tile_rows)
    pad = rows_padded * _LANES - total

    # Row-major flatten is free for a contiguous (B, K) array; keep input dtype.
    x2d = jnp.pad(jnp.reshape(logits, (-1,)), (0, pad)).reshape(rows_padded, _LANES)

    # Pre-expand (label - threshold) to the same flat layout: d[e] = labels[e//k] - e%k.
    d = labels.astype(jnp.int32)[:, None] - jnp.arange(k, dtype=jnp.int32)[None, :]
    d2d = jnp.pad(jnp.reshape(d, (-1,)), (0, pad)).reshape(rows_padded, _LANES)

    in_map = lambda c, i: (c * inner_grid + i, 0)
    kernel = functools.partial(
        _coral_loss_kernel, total=total, tile_rows=tile_rows, inner_grid=inner_grid)

    partials = pl.pallas_call(
        kernel,
        out_shape=jax.ShapeDtypeStruct((_NUM_SPLITS * tile_rows, _LANES), jnp.float32),
        grid_spec=pltpu.PrefetchScalarGridSpec(
            num_scalar_prefetch=0,
            grid=(_NUM_SPLITS, inner_grid),
            in_specs=[pl.BlockSpec((tile_rows, _LANES), in_map),
                      pl.BlockSpec((tile_rows, _LANES), in_map)],
            out_specs=pl.BlockSpec((tile_rows, _LANES), lambda c, i: (c, 0)),
        ),
        compiler_params=pltpu.CompilerParams(
            dimension_semantics=("parallel", "arbitrary")),
        cost_estimate=pl.CostEstimate(
            flops=6 * total,
            transcendentals=2 * total,
            bytes_accessed=(total * logits.dtype.itemsize      # logits
                            + total * 4                        # expanded labels
                            + _NUM_SPLITS * tile_rows * _LANES * 4),  # partials out
        ),
    )(x2d, d2d)

    # Divide by the TRUE element count (padding was masked to 0 in-kernel).
    return jnp.sum(partials) / jnp.float32(total)


def _reference_loss(logits, labels, num_classes):
    k = num_classes - 1
    x = logits.astype(jnp.float32)
    y = (labels[:, None] > jnp.arange(k)[None, :]).astype(jnp.float32)
    per_elem = jnp.maximum(x, 0.0) - x * y + jnp.log1p(jnp.exp(-jnp.abs(x)))
    return jnp.mean(per_elem)


if __name__ == "__main__":
    key = jax.random.PRNGKey(0)
    k_logits, k_labels = jax.random.split(key)

    num_classes = 5          # -> K = 4 binary thresholds
    batch = 8

    logits = jax.random.normal(k_logits, (batch, num_classes - 1), dtype=jnp.float32)
    labels = jax.random.randint(k_labels, (batch,), 0, num_classes, dtype=jnp.int32)

    loss_fn = jax.jit(coral_ordinal_loss, static_argnums=(2,))
    loss = loss_fn(logits, labels, num_classes)
    loss = jax.block_until_ready(loss)

    ref = _reference_loss(logits, labels, num_classes)
    assert jnp.allclose(loss, ref, atol=1e-5, rtol=1e-5), (loss, ref)

    print("KERNEL_OK")
</pallas_src>

<mosaic_0001>
module attributes {stable_mosaic.version = 11 : i64} {
  func.func @_coral_loss_kernel(%arg0: i32, %arg1: i32, %arg2: memref<8x128xf32, #tpu.memory_space<vmem>>, %arg3: memref<8x128xi32, #tpu.memory_space<vmem>>, %arg4: memref<8x128xf32, #tpu.memory_space<vmem>>) attributes {dimension_semantics = [#tpu.dimension_semantics<parallel>, #tpu.dimension_semantics<arbitrary>], iteration_bounds = array<i64: 2, 1>, scalar_prefetch = 0 : i64, scratch_operands = 0 : i64, tpu.core_type = #tpu.core_type<tc>, window_params = [{transform_indices = @transform_0, window_bounds = array<i64: 8, 128>}, {transform_indices = @transform_1, window_bounds = array<i64: 8, 128>}, {transform_indices = @transform_2, window_bounds = array<i64: 8, 128>}]} {
    %c0_i32 = arith.constant 0 : i32
    %0 = arith.cmpi eq, %arg1, %c0_i32 : i32
    %1 = arith.extui %0 : i1 to i32
    %c0_i32_0 = arith.constant 0 : i32
    %2 = arith.cmpi ne, %1, %c0_i32_0 : i32
    scf.if %2 {
      %cst_11 = arith.constant 0.000000e+00 : f32
      %36 = vector.broadcast %cst_11 : f32 to vector<8x128xf32>
      %c0_12 = arith.constant 0 : index
      %c0_13 = arith.constant 0 : index
      %37 = vector.load %arg4[%c0_12, %c0_13] : memref<8x128xf32, #tpu.memory_space<vmem>>, vector<8x128xf32>
      tpu.vector_store %arg4[%c0_12, %c0_13], %36 {strides = array<i32>} : memref<8x128xf32, #tpu.memory_space<vmem>>, vector<8x128xf32>,
    } else {
    }
    %c0 = arith.constant 0 : index
    %c0_1 = arith.constant 0 : index
    %3 = vector.load %arg2[%c0, %c0_1] : memref<8x128xf32, #tpu.memory_space<vmem>>, vector<8x128xf32>
    %c0_2 = arith.constant 0 : index
    %c0_3 = arith.constant 0 : index
    %4 = vector.load %arg3[%c0_2, %c0_3] : memref<8x128xi32, #tpu.memory_space<vmem>>, vector<8x128xi32>
    %c1_i32 = arith.constant 1 : i32
    %5 = arith.muli %arg0, %c1_i32 : i32
    %6 = arith.addi %5, %arg1 : i32
    %c8_i32 = arith.constant 8 : i32
    %7 = arith.muli %6, %c8_i32 : i32
    %8 = tpu.iota {dimensions = array<i32: 0>} : vector<8x128xi32>
    %9 = tpu.iota {dimensions = array<i32: 1>} : vector<8x128xi32>
    %10 = vector.broadcast %7 : i32 to vector<8x128xi32>
    %11 = arith.addi %10, %8 : vector<8x128xi32>
    %c128_i32 = arith.constant 128 : i32
    %12 = vector.broadcast %c128_i32 : i32 to vector<8x128xi32>
    %13 = arith.muli %11, %12 : vector<8x128xi32>
    %14 = arith.addi %13, %9 : vector<8x128xi32>
    %c32_i32 = arith.constant 32 : i32
    %15 = vector.broadcast %c32_i32 : i32 to vector<8x128xi32>
    %16 = arith.cmpi slt, %14, %15 : vector<8x128xi32>
    %c0_i32_4 = arith.constant 0 : i32
    %17 = vector.broadcast %c0_i32_4 : i32 to vector<8x128xi32>
    %18 = arith.cmpi sgt, %4, %17 : vector<8x128xi32>
    %19 = arith.extui %18 : vector<8x128xi1> to vector<8x128xi32>
    %20 = arith.sitofp %19 : vector<8x128xi32> to vector<8x128xf32>
    %cst = arith.constant 0.000000e+00 : f32
    %21 = vector.broadcast %cst : f32 to vector<8x128xf32>
    %22 = arith.maximumf %3, %21 : vector<8x128xf32>
    %23 = arith.mulf %3, %20 : vector<8x128xf32>
    %24 = arith.subf %22, %23 : vector<8x128xf32>
    %25 = math.absf %3 : vector<8x128xf32>
    %cst_5 = arith.constant 0.000000e+00 : f32
    %26 = vector.broadcast %cst_5 : f32 to vector<8x128xf32>
    %27 = arith.subf %26, %25 : vector<8x128xf32>
    %28 = math.exp %27 : vector<8x128xf32>
    %29 = math.log1p %28 : vector<8x128xf32>
    %30 = arith.addf %24, %29 : vector<8x128xf32>
    %cst_6 = arith.constant 0.000000e+00 : f32
    %31 = vector.broadcast %cst_6 : f32 to vector<8x128xf32>
    %32 = arith.select %16, %30, %31 : vector<8x128xi1>, vector<8x128xf32>
    %c0_7 = arith.constant 0 : index
    %c0_8 = arith.constant 0 : index
    %33 = vector.load %arg4[%c0_7, %c0_8] : memref<8x128xf32, #tpu.memory_space<vmem>>, vector<8x128xf32>
    %34 = arith.addf %33, %32 : vector<8x128xf32>
    %c0_9 = arith.constant 0 : index
    %c0_10 = arith.constant 0 : index
    %35 = vector.load %arg4[%c0_9, %c0_10] : memref<8x128xf32, #tpu.memory_space<vmem>>, vector<8x128xf32>
    tpu.vector_store %arg4[%c0_9, %c0_10], %34 {strides = array<i32>} : memref<8x128xf32, #tpu.memory_space<vmem>>, vector<8x128xf32>,
    return
  }
  func.func @transform_0(%arg0: i32, %arg1: i32) -> (i32, i32) {
    %c1_i32 = arith.constant 1 : i32
    %0 = arith.muli %arg0, %c1_i32 : i32
    %1 = arith.addi %0, %arg1 : i32
    %c0_i32 = arith.constant 0 : i32
    %c0_i32_0 = arith.constant 0 : i32
    return %1, %c0_i32 : i32, i32
  }
  func.func @transform_1(%arg0: i32, %arg1: i32) -> (i32, i32) {
    %c1_i32 = arith.constant 1 : i32
    %0 = arith.muli %arg0, %c1_i32 : i32
    %1 = arith.addi %0, %arg1 : i32
    %c0_i32 = arith.constant 0 : i32
    %c0_i32_0 = arith.constant 0 : i32
    return %1, %c0_i32 : i32, i32
  }
  func.func @transform_2(%arg0: i32, %arg1: i32) -> (i32, i32) {
    %c0_i32 = arith.constant 0 : i32
    %c0_i32_0 = arith.constant 0 : i32
    return %arg0, %c0_i32 : i32, i32
  }
}

</mosaic_0001>

<bundles_post_ra>
// kernel: coral_ordinal_loss.1
= control target key start
LH: loop header
LB: loop body
LE: loop exit
PB: predicated region body
PF: predicated region fallthrough
CT: control target
= control target key end

     0   :  { %s378_s9 = smov 0   ;;  %s380_s10 = smov 0   ;;  %s419_s0 = inlined_call_operand.vmem [shape: f32[16,128], index: 0, kind: input, shape index: {}]   ;;  %s420_s1 = inlined_call_operand.vmem [shape: s32[16,128], index: 1, kind: input, shape index: {}]   ;;  %s421_s2 = inlined_call_operand.vmem [shape: f32[16,128], index: 2, kind: output, shape index: {}]  }
   0x1   :  { %s382_s11 = smov 0  }
   0x2 LB: > { %s24_s12 = sadd.s32 1, %s356_s10  ;;  %p301_p0 = scmp.ge.s32.totalorder %s360_s11, 1  ;;  %s360_s11 = sphi %s382_s11, %s12_s11   ;;  %s356_s10 = sphi %s380_s10, %s423_s10   ;;  %s352_s9 = sphi %s378_s9, %s422_s9  }
   0x3   : > { %p26_p1 = scmp.ge.s32.totalorder %s24_s12, 2  ;;  %p140_p2 = scmp.lt.s32.totalorder %s360_s11, 3 }
   0x5   : > { %s425_s12 = smov (%p26_p1, %s24_s12), 0  ;;  %p141_p3 = pnand %p301_p0, %p140_p2 }
   0x6   : > { %p167_p4 = scmp.lt.s32.totalorder (!%p141_p3), %s352_s9, 1  ;;  %s305_s21 = sshll.u32 (!%p141_p3), %s352_s9, 3 }
   0x7   : > { %144 = sbr.rel (%p141_p3) target bundleno = 46 (0x2e), region = 28 }
   0xc   : > { %s168_s13 = scalar_select %p167_p4, %s352_s9, 1  ;;  %v191_v4 = vlaneseq  ;;  %v195_v7 = vstv %s305_s21  ;;  %v362_v12 = vmov 0.0  }
   0xe   : > { %s396_s14 = sshll.u32 %s168_s13, 3  ;;  %v192_v6 = vshrl.u32 %v191_v4, 7  ;;  %v194_v15 = vand.u32 127, %v191_v4 }
   0xf   : > { %s170_s17 = scalar_lea.vmem %s419_s0, %s396_s14  ;;  %s176_s20 = scalar_lea.vmem %s420_s1, %s396_s14 }
  0x10   : > { %v187_v0 = vld [vmem:[%s170_s17] sm:$0xff]  ;;  %v196_v9 = vadd.s32 %v195_v7, %v192_v6  ;;  %s181_s24 = scalar_lea.vmem %s421_s2, %s396_s14 }
  0x11   : > { %v206_v1 = vand.u32 2147483647, %v187_v0  ;;  %v188_v5 = vld [vmem:[%s176_s20] sm:$0xff]  ;;  %v203_v17 = vmax.f32 %v187_v0, 0.0 }
  0x12   : > { %vm200_vm0 = vcmp.gt.s32.totalorder %v188_v5, 0  ;;  %v197_v16 = vmul.u32 128, %v196_v9 }
  0x13   : > { %v207_v2 = vsub.f32 0.0, %v206_v1  ;;  %v306_v13 = vsel %vm200_vm0, 1.0, %v362_v12 }
  0x14   : > { %v204_v18 = vmul.f32 %v306_v13, %v187_v0  ;;  %v198_v21 = vadd.s32 %v197_v16, %v194_v15 }
  0x15   : > { %v208_v3 = vmul.f32 1.442695, %v207_v2 }
  0x16   : > { %v205_v23 = vsub.f32 %v203_v17, %v204_v18  ;;  %vm199_vm2 = vcmp.lt.s32.totalorder %v198_v21, 32 }
  0x17   : > { %334 = vpow2.f32 %v208_v3 }
  0x1d   : > { %v335_v8 = vpop.eup %334 }
  0x1e   : > { %v210_v10 = vadd.f32 1.0, %v335_v8  ;;  %v213_v11 = vmul.f32 -0.5, %v335_v8  ;;  %v216_v19 = vand.u32 2147483647, %v335_v8 }
  0x20   : > { %336 = vlog2.f32 %v210_v10  ;;  %v214_v14 = vadd.f32 1.0, %v213_v11  ;;  %vm217_vm1 = vcmp.lt.f32.partialorder %v216_v19, 0.0004427343 }
  0x22   : > { %v215_v20 = vmul.f32 %v335_v8, %v214_v14 }
  0x26   : > { %v337_v22 = vpop.eup %336 }
  0x27   : > { %v212_v24 = vmul.f32 0.6931472, %v337_v22 }
  0x29   : > { %v218_v25 = vsel %vm217_vm1, %v215_v20, %v212_v24 }
  0x2a   : > { %v219_v26 = vadd.f32 %v218_v25, %v205_v23 }
  0x2c   : > { %v220_v27 = vsel %vm199_vm2, %v219_v26, 0.0 }
  0x2d   : > { %223 = vst [vmem:[%s181_s24] sm:$0xff] %v220_v27 }
  0x2e PF: > { %s12_s11 = sadd.s32 1, %s360_s11   ;;  %s422_s9 = smov %s356_s10 }
  0x2f   : > { %p9_p5 = scmp.ge.s32.totalorder %s12_s11, 4   ;;  %s423_s10 = smov %s425_s12 }
  0x31   :  { %11 = sbr.rel (!%p9_p5) target bundleno = 2 (0x2), region = 65 }

</bundles_post_ra>
